<compile_context>
chip_gen: v5e
topology: v5e:2x2
jax: 0.10.0
libtpu: 0.0.40
codegen_flags: <defaults>
</compile_context>

<pallas_src>
import functools

import jax
import jax.numpy as jnp
from jax.experimental import pallas as pl
from jax.experimental.pallas import tpu as pltpu


# ----------------------------------------------------------------------------
# Fused kernel: frontend conv -> transformer -> top-down conv -> classifier.
# One grid step per batch element; all intermediates stay in VMEM / vregs.
# ----------------------------------------------------------------------------
def _pon_fused_kernel(patch_ref, fw_ref, fb_ref, vt_ref, vtb_ref,
                      tw_ref, tdb_ref, cw_ref, cb_ref, calib_ref,
                      o_ref, bevp_ref, *, W, Z, Cbev):
    """patch_ref: (1, W, H*9*Cin) bf16  im2col'd image rows (lane-dense)
       fw_ref:    (H*9*Cin, H*Cf) bf16  frontend conv, block-diag over rows h
       fb_ref:    (1, H*Cf)       f32
       vt_ref:    (H*Cf, Z*Cbev)  bf16  dense vertical->depth transformer
       vtb_ref:   (1, Z*Cbev)     f32
       tw_ref:    (9*Z*Cbev, Z*Cbev) bf16  top-down conv, block-diag over z
       tdb_ref:   (1, Z*Cbev)     f32
       cw_ref:    (Z*Cbev, Z*Ncls) bf16    1x1 classifier, block-diag over z
       cb_ref:    (1, Z*Ncls)     f32
       calib_ref: (N*9,)          f32 SMEM, fx = calib[n*9]
       o_ref:     (1, W, Z*Ncls)  f32 logits (lane-dense store)
       bevp_ref:  VMEM (W+2, (Z+2)*Cbev) bf16 zero-padded BEV scratch
    """
    n = pl.program_id(0)
    scale = calib_ref[n * 9] * (1.0 / 256.0)   # fx / 256, scalar read first

    # ---- frontend 3x3 conv: single K = H*9*Cin matmul -> (W, H*Cf) ----
    feats = jnp.dot(patch_ref[0], fw_ref[...],
                    preferred_element_type=jnp.float32)
    feats = jnp.maximum(feats + fb_ref[0], 0.0)

    # ---- vertical->depth transformer: single K = H*Cf matmul -> (W, Z*Cbev) ----
    bev = jnp.dot(feats.astype(jnp.bfloat16), vt_ref[...],
                  preferred_element_type=jnp.float32)
    bev = jnp.maximum(bev * scale + vtb_ref[0], 0.0)

    # ---- in-kernel zero padding of the BEV slab for the 3x3 top-down conv ----
    bevp_ref[...] = jnp.zeros_like(bevp_ref)
    bevp_ref[pl.ds(1, W), pl.ds(Cbev, Z * Cbev)] = bev.astype(jnp.bfloat16)

    # nine shifted taps concatenated along K; stays on (W, Z*Cbev) lane-dense
    taps = [bevp_ref[pl.ds(di, W), pl.ds(dj * Cbev, Z * Cbev)]
            for di in range(3) for dj in range(3)]
    patch_td = jnp.concatenate(taps, axis=1)             # (W, 9*Z*Cbev) bf16

    # ---- top-down 3x3 conv: single K = 9*Z*Cbev matmul -> (W, Z*Cbev) ----
    td = jnp.dot(patch_td, tw_ref[...], preferred_element_type=jnp.float32)
    td = jnp.maximum(td + tdb_ref[0], 0.0)

    # ---- 1x1 classifier epilogue; lane-dense (W, Z*Ncls) store ----
    logits = jnp.dot(td.astype(jnp.bfloat16), cw_ref[...],
                     preferred_element_type=jnp.float32) + cb_ref[0]
    o_ref[0] = logits


# ----------------------------------------------------------------------------
# Forward pass wrapper
# ----------------------------------------------------------------------------
def pyramid_occupancy_network(image_nchw, calib, params, *, Z, Cbev):
    """frontend -> v_transformer(., calib) -> topdown -> classifier."""
    N, Cin, H, W = image_nchw.shape
    Cf = params["frontend_b"].shape[-1]
    Ncls = params["cls_b"].shape[-1]
    Mbev = Z * Cbev
    K9 = 9 * Cin

    # Tiny wrapper-side im2col (bf16): (N, W, H*9*Cin) with lane-dense rows,
    # row index w, column index h*9*Cin + t*Cin + cin (t = di*3 + dj).
    x = jnp.transpose(image_nchw, (0, 2, 3, 1)).astype(jnp.bfloat16)
    xp = jnp.pad(x, ((0, 0), (1, 1), (1, 1), (0, 0)))
    taps = [xp[:, di:di + H, dj:dj + W, :]
            for di in range(3) for dj in range(3)]
    patch = jnp.stack(taps, axis=3)                       # (N, H, W, 9, Cin)
    patch = jnp.transpose(patch, (0, 2, 1, 3, 4)).reshape(N, W, H * K9)

    # Block-diagonal weight expansion so every conv is a single lane-dense
    # matmul inside the kernel (exact: identity entries are 0/1 in bf16).
    eye_h = jnp.eye(H, dtype=jnp.bfloat16)
    eye_z = jnp.eye(Z, dtype=jnp.bfloat16)
    fw27 = params["frontend_w"].reshape(K9, Cf)
    fw_big = jnp.einsum('hk,jc->hjkc', eye_h, fw27).reshape(H * K9, H * Cf)
    fb_big = jnp.tile(params["frontend_b"], H).reshape(1, H * Cf)
    vt2 = params["vt_w"].reshape(H * Cf, Mbev)
    vtb = params["vt_b"].reshape(1, Mbev)
    tw_big = jnp.einsum('zy,tcd->tzcyd', eye_z,
                        params["topdown_w"]).reshape(9 * Mbev, Mbev)
    tdb_big = jnp.tile(params["topdown_b"], Z).reshape(1, Mbev)
    cw_big = jnp.einsum('zy,ck->zcyk', eye_z,
                        params["cls_w"]).reshape(Mbev, Z * Ncls)
    cb_big = jnp.tile(params["cls_b"], Z).reshape(1, Z * Ncls)

    calib_flat = calib.reshape(N * 9).astype(jnp.float32)

    kern = functools.partial(_pon_fused_kernel, W=W, Z=Z, Cbev=Cbev)
    logits_flat = pl.pallas_call(
        kern,
        out_shape=jax.ShapeDtypeStruct((N, W, Z * Ncls), jnp.float32),
        grid=(N,),
        in_specs=[
            pl.BlockSpec((1, W, H * K9), lambda n: (n, 0, 0)),
            pl.BlockSpec((H * K9, H * Cf), lambda n: (0, 0)),
            pl.BlockSpec((1, H * Cf), lambda n: (0, 0)),
            pl.BlockSpec((H * Cf, Mbev), lambda n: (0, 0)),
            pl.BlockSpec((1, Mbev), lambda n: (0, 0)),
            pl.BlockSpec((9 * Mbev, Mbev), lambda n: (0, 0)),
            pl.BlockSpec((1, Mbev), lambda n: (0, 0)),
            pl.BlockSpec((Mbev, Z * Ncls), lambda n: (0, 0)),
            pl.BlockSpec((1, Z * Ncls), lambda n: (0, 0)),
            pl.BlockSpec(memory_space=pltpu.MemorySpace.SMEM),
        ],
        out_specs=pl.BlockSpec((1, W, Z * Ncls), lambda n: (n, 0, 0)),
        scratch_shapes=[pltpu.VMEM((W + 2, (Z + 2) * Cbev), jnp.bfloat16)],
        compiler_params=pltpu.CompilerParams(
            # TODO(synk): on v7x, CORE_PARALLEL on the batch axis would reach
            # the second TensorCore; "parallel" is the portable choice.
            dimension_semantics=("parallel",),
            vmem_limit_bytes=32 * 1024 * 1024),
    )(patch, fw_big, fb_big, vt2, vtb, tw_big, tdb_big, cw_big, cb_big,
      calib_flat)

    # (N, W, Z*Ncls) -> (N, Ncls, Z, W); tiny tensor, the transpose is free.
    return jnp.transpose(logits_flat.reshape(N, W, Z, Ncls), (0, 3, 2, 1))


def init_params(key, *, cin, cfeat, h, z, cbev, ncls):
    ks = jax.random.split(key, 4)

    def winit(k, shape, fan_in):
        return (jax.random.normal(k, shape, jnp.float32)
                / jnp.sqrt(jnp.float32(fan_in)))

    return {
        # frontend conv taps stored as (9, Cin, Cf) (t = di*3 + dj)
        "frontend_w": winit(ks[0], (9, cin, cfeat), 9 * cin).astype(jnp.bfloat16),
        "frontend_b": jnp.zeros((cfeat,), jnp.float32),
        # transformer stored as (H, Cf, Z*Cbev)
        "vt_w": winit(ks[1], (h, cfeat, z * cbev), h * cfeat).astype(jnp.bfloat16),
        "vt_b": jnp.zeros((z * cbev,), jnp.float32),
        "topdown_w": winit(ks[2], (9, cbev, cbev), 9 * cbev).astype(jnp.bfloat16),
        "topdown_b": jnp.zeros((cbev,), jnp.float32),
        "cls_w": winit(ks[3], (cbev, ncls), cbev).astype(jnp.bfloat16),
        "cls_b": jnp.zeros((ncls,), jnp.float32),
    }


if __name__ == "__main__":
    key = jax.random.PRNGKey(0)
    k_img, k_par = jax.random.split(key)

    N, CIN, H, W = 2, 3, 16, 16         # image batch / channels / spatial
    CFEAT, Z, CBEV, NCLS = 8, 16, 8, 4  # feature ch / BEV depth / BEV ch / classes

    image = jax.random.normal(k_img, (N, CIN, H, W), jnp.float32)
    # simple per-batch 3x3 camera intrinsics
    base_calib = jnp.array([[200.0, 0.0, 8.0],
                            [0.0, 200.0, 8.0],
                            [0.0, 0.0, 1.0]], jnp.float32)
    calib = base_calib[None] * jnp.array([1.0, 1.1], jnp.float32)[:, None, None]

    params = init_params(k_par, cin=CIN, cfeat=CFEAT, h=H, z=Z, cbev=CBEV,
                         ncls=NCLS)

    fwd = jax.jit(functools.partial(pyramid_occupancy_network, Z=Z, Cbev=CBEV))
    logits = fwd(image, calib, params)
    logits = jax.block_until_ready(logits)
    assert logits.shape == (N, NCLS, Z, W), logits.shape
    assert bool(jnp.all(jnp.isfinite(logits)))
    print("KERNEL_OK")
</pallas_src>

<mosaic_0001>
module attributes {stable_mosaic.version = 11 : i64} {
  func.func @_pon_fused_kernel(%arg0: i32, %arg1: memref<1x16x432xbf16, #tpu.memory_space<vmem>>, %arg2: memref<432x128xbf16, #tpu.memory_space<vmem>>, %arg3: memref<1x128xf32, #tpu.memory_space<vmem>>, %arg4: memref<128x128xbf16, #tpu.memory_space<vmem>>, %arg5: memref<1x128xf32, #tpu.memory_space<vmem>>, %arg6: memref<1152x128xbf16, #tpu.memory_space<vmem>>, %arg7: memref<1x128xf32, #tpu.memory_space<vmem>>, %arg8: memref<128x64xbf16, #tpu.memory_space<vmem>>, %arg9: memref<1x64xf32, #tpu.memory_space<vmem>>, %arg10: memref<18xf32, #tpu.memory_space<smem>>, %arg11: memref<1x16x64xf32, #tpu.memory_space<vmem>>, %arg12: memref<18x144xbf16, #tpu.memory_space<vmem>>) attributes {dimension_semantics = [#tpu.dimension_semantics<parallel>], iteration_bounds = array<i64: 2>, scalar_prefetch = 0 : i64, scratch_operands = 1 : i64, tpu.core_type = #tpu.core_type<tc>, window_params = [{transform_indices = @transform_0, window_bounds = array<i64: 1, 16, 432>}, {pipeline_mode = #tpu.pipeline_mode<synchronous>, transform_indices = @transform_1, window_bounds = array<i64: 432, 128>}, {pipeline_mode = #tpu.pipeline_mode<synchronous>, transform_indices = @transform_2, window_bounds = array<i64: 1, 128>}, {pipeline_mode = #tpu.pipeline_mode<synchronous>, transform_indices = @transform_3, window_bounds = array<i64: 128, 128>}, {pipeline_mode = #tpu.pipeline_mode<synchronous>, transform_indices = @transform_4, window_bounds = array<i64: 1, 128>}, {pipeline_mode = #tpu.pipeline_mode<synchronous>, transform_indices = @transform_5, window_bounds = array<i64: 1152, 128>}, {pipeline_mode = #tpu.pipeline_mode<synchronous>, transform_indices = @transform_6, window_bounds = array<i64: 1, 128>}, {pipeline_mode = #tpu.pipeline_mode<synchronous>, transform_indices = @transform_7, window_bounds = array<i64: 128, 64>}, {pipeline_mode = #tpu.pipeline_mode<synchronous>, transform_indices = @transform_8, window_bounds = array<i64: 1, 64>}, {transform_indices = @transform_9, window_bounds = array<i64: 18>}, {transform_indices = @transform_10, window_bounds = array<i64: 1, 16, 64>}]} {
    %c9_i32 = arith.constant 9 : i32
    %0 = arith.muli %arg0, %c9_i32 : i32
    %1 = arith.index_cast %0 : i32 to index
    %2 = memref.load %arg10[%1] : memref<18xf32, #tpu.memory_space<smem>>
    %cst = arith.constant 3.906250e-03 : f32
    %3 = arith.mulf %2, %cst : f32
    %c0 = arith.constant 0 : index
    %c0_0 = arith.constant 0 : index
    %c0_1 = arith.constant 0 : index
    %4 = vector.load %arg1[%c0, %c0_0, %c0_1] : memref<1x16x432xbf16, #tpu.memory_space<vmem>>, vector<1x16x432xbf16>
    %5 = vector.shape_cast %4 : vector<1x16x432xbf16> to vector<16x432xbf16>
    %c0_2 = arith.constant 0 : index
    %c0_3 = arith.constant 0 : index
    %6 = vector.load %arg2[%c0_2, %c0_3] : memref<432x128xbf16, #tpu.memory_space<vmem>>, vector<432x128xbf16>
    %cst_4 = arith.constant dense<0.000000e+00> : vector<16x128xf32>
    %7 = tpu.matmul %5, %6, %cst_4 {dimension_numbers = #tpu.dot_dimension_numbers<[1], [0], [0], [1], [0, 0, 1, 1], [], []>} : vector<16x432xbf16>, vector<432x128xbf16>, vector<16x128xf32> -> vector<16x128xf32>
    %c0_5 = arith.constant 0 : index
    %c0_6 = arith.constant 0 : index
    %8 = vector.load %arg3[%c0_5, %c0_6] : memref<1x128xf32, #tpu.memory_space<vmem>>, vector<1x128xf32>
    %9 = vector.shape_cast %8 : vector<1x128xf32> to vector<128xf32>
    %10 = vector.shape_cast %9 : vector<128xf32> to vector<1x128xf32>
    %11 = vector.broadcast %10 : vector<1x128xf32> to vector<16x128xf32>
    %12 = arith.addf %7, %11 : vector<16x128xf32>
    %cst_7 = arith.constant 0.000000e+00 : f32
    %13 = vector.broadcast %cst_7 : f32 to vector<16x128xf32>
    %14 = arith.maximumf %12, %13 : vector<16x128xf32>
    %15 = arith.truncf %14 : vector<16x128xf32> to vector<16x128xbf16>
    %c0_8 = arith.constant 0 : index
    %c0_9 = arith.constant 0 : index
    %16 = vector.load %arg4[%c0_8, %c0_9] : memref<128x128xbf16, #tpu.memory_space<vmem>>, vector<128x128xbf16>
    %cst_10 = arith.constant dense<0.000000e+00> : vector<16x128xf32>
    %17 = tpu.matmul %15, %16, %cst_10 {dimension_numbers = #tpu.dot_dimension_numbers<[1], [0], [0], [1], [0, 0, 1, 1], [], []>} : vector<16x128xbf16>, vector<128x128xbf16>, vector<16x128xf32> -> vector<16x128xf32>
    %18 = vector.broadcast %3 : f32 to vector<16x128xf32>
    %19 = arith.mulf %17, %18 : vector<16x128xf32>
    %c0_11 = arith.constant 0 : index
    %c0_12 = arith.constant 0 : index
    %20 = vector.load %arg5[%c0_11, %c0_12] : memref<1x128xf32, #tpu.memory_space<vmem>>, vector<1x128xf32>
    %21 = vector.shape_cast %20 : vector<1x128xf32> to vector<128xf32>
    %22 = vector.shape_cast %21 : vector<128xf32> to vector<1x128xf32>
    %23 = vector.broadcast %22 : vector<1x128xf32> to vector<16x128xf32>
    %24 = arith.addf %19, %23 : vector<16x128xf32>
    %cst_13 = arith.constant 0.000000e+00 : f32
    %25 = vector.broadcast %cst_13 : f32 to vector<16x128xf32>
    %26 = arith.maximumf %24, %25 : vector<16x128xf32>
    %cst_14 = arith.constant 0.000000e+00 : bf16
    %27 = vector.broadcast %cst_14 : bf16 to vector<18x144xbf16>
    %c0_15 = arith.constant 0 : index
    %c0_16 = arith.constant 0 : index
    %28 = vector.load %arg12[%c0_15, %c0_16] : memref<18x144xbf16, #tpu.memory_space<vmem>>, vector<18x144xbf16>
    tpu.vector_store %arg12[%c0_15, %c0_16], %27 {strides = array<i32>} : memref<18x144xbf16, #tpu.memory_space<vmem>>, vector<18x144xbf16>,
    %29 = arith.truncf %26 : vector<16x128xf32> to vector<16x128xbf16>
    %c1 = arith.constant 1 : index
    %c8 = arith.constant 8 : index
    %30 = vector.load %arg12[%c1, %c8] : memref<18x144xbf16, #tpu.memory_space<vmem>>, vector<16x128xbf16>
    tpu.vector_store %arg12[%c1, %c8], %29 {strides = array<i32>} : memref<18x144xbf16, #tpu.memory_space<vmem>>, vector<16x128xbf16>,
    %c0_17 = arith.constant 0 : index
    %c0_18 = arith.constant 0 : index
    %31 = vector.load %arg12[%c0_17, %c0_18] : memref<18x144xbf16, #tpu.memory_space<vmem>>, vector<16x128xbf16>
    %c0_19 = arith.constant 0 : index
    %c8_20 = arith.constant 8 : index
    %32 = vector.load %arg12[%c0_19, %c8_20] : memref<18x144xbf16, #tpu.memory_space<vmem>>, vector<16x128xbf16>
    %c0_21 = arith.constant 0 : index
    %c16 = arith.constant 16 : index
    %33 = vector.load %arg12[%c0_21, %c16] : memref<18x144xbf16, #tpu.memory_space<vmem>>, vector<16x128xbf16>
    %c1_22 = arith.constant 1 : index
    %c0_23 = arith.constant 0 : index
    %34 = vector.load %arg12[%c1_22, %c0_23] : memref<18x144xbf16, #tpu.memory_space<vmem>>, vector<16x128xbf16>
    %c1_24 = arith.constant 1 : index
    %c8_25 = arith.constant 8 : index
    %35 = vector.load %arg12[%c1_24, %c8_25] : memref<18x144xbf16, #tpu.memory_space<vmem>>, vector<16x128xbf16>
    %c1_26 = arith.constant 1 : index
    %c16_27 = arith.constant 16 : index
    %36 = vector.load %arg12[%c1_26, %c16_27] : memref<18x144xbf16, #tpu.memory_space<vmem>>, vector<16x128xbf16>
    %c2 = arith.constant 2 : index
    %c0_28 = arith.constant 0 : index
    %37 = vector.load %arg12[%c2, %c0_28] : memref<18x144xbf16, #tpu.memory_space<vmem>>, vector<16x128xbf16>
    %c2_29 = arith.constant 2 : index
    %c8_30 = arith.constant 8 : index
    %38 = vector.load %arg12[%c2_29, %c8_30] : memref<18x144xbf16, #tpu.memory_space<vmem>>, vector<16x128xbf16>
    %c2_31 = arith.constant 2 : index
    %c16_32 = arith.constant 16 : index
    %39 = vector.load %arg12[%c2_31, %c16_32] : memref<18x144xbf16, #tpu.memory_space<vmem>>, vector<16x128xbf16>
    %40 = tpu.concatenate %31, %32, %33, %34, %35, %36, %37, %38, %39 in 1 : vector<16x128xbf16>, vector<16x128xbf16>, vector<16x128xbf16>, vector<16x128xbf16>, vector<16x128xbf16>, vector<16x128xbf16>, vector<16x128xbf16>, vector<16x128xbf16>, vector<16x128xbf16> -> vector<16x1152xbf16>
    %c0_33 = arith.constant 0 : index
    %c0_34 = arith.constant 0 : index
    %41 = vector.load %arg6[%c0_33, %c0_34] : memref<1152x128xbf16, #tpu.memory_space<vmem>>, vector<1152x128xbf16>
    %cst_35 = arith.constant dense<0.000000e+00> : vector<16x128xf32>
    %42 = tpu.matmul %40, %41, %cst_35 {dimension_numbers = #tpu.dot_dimension_numbers<[1], [0], [0], [1], [0, 0, 1, 1], [], []>} : vector<16x1152xbf16>, vector<1152x128xbf16>, vector<16x128xf32> -> vector<16x128xf32>
    %c0_36 = arith.constant 0 : index
    %c0_37 = arith.constant 0 : index
    %43 = vector.load %arg7[%c0_36, %c0_37] : memref<1x128xf32, #tpu.memory_space<vmem>>, vector<1x128xf32>
    %44 = vector.shape_cast %43 : vector<1x128xf32> to vector<128xf32>
    %45 = vector.shape_cast %44 : vector<128xf32> to vector<1x128xf32>
    %46 = vector.broadcast %45 : vector<1x128xf32> to vector<16x128xf32>
    %47 = arith.addf %42, %46 : vector<16x128xf32>
    %cst_38 = arith.constant 0.000000e+00 : f32
    %48 = vector.broadcast %cst_38 : f32 to vector<16x128xf32>
    %49 = arith.maximumf %47, %48 : vector<16x128xf32>
    %50 = arith.truncf %49 : vector<16x128xf32> to vector<16x128xbf16>
    %c0_39 = arith.constant 0 : index
    %c0_40 = arith.constant 0 : index
    %51 = vector.load %arg8[%c0_39, %c0_40] : memref<128x64xbf16, #tpu.memory_space<vmem>>, vector<128x64xbf16>
    %cst_41 = arith.constant dense<0.000000e+00> : vector<16x64xf32>
    %52 = tpu.matmul %50, %51, %cst_41 {dimension_numbers = #tpu.dot_dimension_numbers<[1], [0], [0], [1], [0, 0, 1, 1], [], []>} : vector<16x128xbf16>, vector<128x64xbf16>, vector<16x64xf32> -> vector<16x64xf32>
    %c0_42 = arith.constant 0 : index
    %c0_43 = arith.constant 0 : index
    %53 = vector.load %arg9[%c0_42, %c0_43] : memref<1x64xf32, #tpu.memory_space<vmem>>, vector<1x64xf32>
    %54 = vector.shape_cast %53 : vector<1x64xf32> to vector<64xf32>
    %55 = vector.shape_cast %54 : vector<64xf32> to vector<1x64xf32>
    %56 = vector.broadcast %55 : vector<1x64xf32> to vector<16x64xf32>
    %57 = arith.addf %52, %56 : vector<16x64xf32>
    %c0_44 = arith.constant 0 : index
    %c0_45 = arith.constant 0 : index
    %c0_46 = arith.constant 0 : index
    %58 = vector.load %arg11[%c0_44, %c0_45, %c0_46] : memref<1x16x64xf32, #tpu.memory_space<vmem>>, vector<1x16x64xf32>
    %59 = vector.shape_cast %58 : vector<1x16x64xf32> to vector<16x64xf32>
    %60 = vector.shape_cast %57 : vector<16x64xf32> to vector<1x16x64xf32>
    tpu.vector_store %arg11[%c0_44, %c0_45, %c0_46], %60 {strides = array<i32>} : memref<1x16x64xf32, #tpu.memory_space<vmem>>, vector<1x16x64xf32>,
    return
  }
  func.func @transform_0(%arg0: i32) -> (i32, i32, i32) {
    %c0_i32 = arith.constant 0 : i32
    %c0_i32_0 = arith.constant 0 : i32
    %c0_i32_1 = arith.constant 0 : i32
    return %arg0, %c0_i32, %c0_i32_0 : i32, i32, i32
  }
  func.func @transform_1(%arg0: i32) -> (i32, i32) {
    %c0_i32 = arith.constant 0 : i32
    %c0_i32_0 = arith.constant 0 : i32
    %c0_i32_1 = arith.constant 0 : i32
    return %c0_i32, %c0_i32_0 : i32, i32
  }
  func.func @transform_2(%arg0: i32) -> (i32, i32) {
    %c0_i32 = arith.constant 0 : i32
    %c0_i32_0 = arith.constant 0 : i32
    %c0_i32_1 = arith.constant 0 : i32
    return %c0_i32, %c0_i32_0 : i32, i32
  }
  func.func @transform_3(%arg0: i32) -> (i32, i32) {
    %c0_i32 = arith.constant 0 : i32
    %c0_i32_0 = arith.constant 0 : i32
    %c0_i32_1 = arith.constant 0 : i32
    return %c0_i32, %c0_i32_0 : i32, i32
  }
  func.func @transform_4(%arg0: i32) -> (i32, i32) {
    %c0_i32 = arith.constant 0 : i32
    %c0_i32_0 = arith.constant 0 : i32
    %c0_i32_1 = arith.constant 0 : i32
    return %c0_i32, %c0_i32_0 : i32, i32
  }
  func.func @transform_5(%arg0: i32) -> (i32, i32) {
    %c0_i32 = arith.constant 0 : i32
    %c0_i32_0 = arith.constant 0 : i32
    %c0_i32_1 = arith.constant 0 : i32
    return %c0_i32, %c0_i32_0 : i32, i32
  }
  func.func @transform_6(%arg0: i32) -> (i32, i32) {
    %c0_i32 = arith.constant 0 : i32
    %c0_i32_0 = arith.constant 0 : i32
    %c0_i32_1 = arith.constant 0 : i32
    return %c0_i32, %c0_i32_0 : i32, i32
  }
  func.func @transform_7(%arg0: i32) -> (i32, i32) {
    %c0_i32 = arith.constant 0 : i32
    %c0_i32_0 = arith.constant 0 : i32
    %c0_i32_1 = arith.constant 0 : i32
    return %c0_i32, %c0_i32_0 : i32, i32
  }
  func.func @transform_8(%arg0: i32) -> (i32, i32) {
    %c0_i32 = arith.constant 0 : i32
    %c0_i32_0 = arith.constant 0 : i32
    %c0_i32_1 = arith.constant 0 : i32
    return %c0_i32, %c0_i32_0 : i32, i32
  }
  func.func @transform_9(%arg0: i32) -> i32 {
    %c0_i32 = arith.constant 0 : i32
    %c0_i32_0 = arith.constant 0 : i32
    return %c0_i32 : i32
  }
  func.func @transform_10(%arg0: i32) -> (i32, i32, i32) {
    %c0_i32 = arith.constant 0 : i32
    %c0_i32_0 = arith.constant 0 : i32
    %c0_i32_1 = arith.constant 0 : i32
    return %arg0, %c0_i32, %c0_i32_0 : i32, i32, i32
  }
}

</mosaic_0001>

<bundles_post_ra>
// kernel: tile.18
= control target key start
LH: loop header
LB: loop body
LE: loop exit
PB: predicated region body
PF: predicated region fallthrough
CT: control target
= control target key end

     0   :  { %s28_s0 = inlined_call_operand.vmem [shape: f32[8], index: 0, kind: input, shape index: {}]   ;;  %s29_s1 = inlined_call_operand.vmem [shape: f32[16,8], index: 1, kind: output, shape index: {}]  }
   0x1   :  { %v4_v0 = vld [vmem:[%s28_s0] ss:$0 sm:$0xff] }
   0x2   :  { %5 = vst [vmem:[%s29_s1] sm:$0xff] %v4_v0 }
   0x3   :  { %8 = vst [vmem:[%s29_s1 + $0x8] sm:$0xff] %v4_v0 }

// kernel: tile.19
= control target key start
LH: loop header
LB: loop body
LE: loop exit
PB: predicated region body
PF: predicated region fallthrough
CT: control target
= control target key end

     0   :  { %s131_s10 = smov 120   ;;  %s132_s11 = smov 104   ;;  %vm3_vm0 = vcmask 64512   ;;  %vm9_vm1 = vcmask 1048512   ;;  %vm15_vm2 = vcmask 982912   ;;  %vm21_vm3 = vcmask 917312   ;;  %s207_s0 = inlined_call_operand.vmem [shape: f32[16,8], index: 0, kind: input, shape index: {}]   ;;  %s208_s1 = inlined_call_operand.vmem [shape: f32[1,128], index: 1, kind: output, shape index: {}]  }
   0x1   :  { %v101_v0 = vld [vmem:[%s207_s0 + $0xf] sm:$0x1]   ;;  %v103_v1 = vld [vmem:[%s207_s0 + $0xd] sm:$0x1]   ;;  %v105_v2 = vld [vmem:[%s207_s0 + $0xb] sm:$0x1]  }
   0x2   :  { %7 = vrot.lane.b32.xlu0 %v101_v0, %s131_s10  ;;  %19 = vrot.lane.b32.xlu1 %v103_v1, %s132_s11  ;;  %s133_s14 = smov 88   ;;  %v102_v3 = vld [vmem:[%s207_s0 + $0xe] sm:$0x1]   ;;  %v104_v4 = vld [vmem:[%s207_s0 + $0xc] sm:$0x1]   ;;  %s134_s19 = smov 112  }
   0x3   :  { %31 = vrot.lane.b32.xlu2 %v105_v2, %s133_s14  ;;  %s135_s20 = smov 96   ;;  %v106_v5 = vld [vmem:[%s207_s0 + $0xa] sm:$0x1]   ;;  %s136_s23 = smov 80   ;;  %v107_v6 = vld [vmem:[%s207_s0 + $0x9] sm:$0x1]  }
   0x4   :  { %v108_v7 = vld [vmem:[%s207_s0 + $0x8] sm:$0x1]   ;;  %s137_s28 = smov 72   ;;  %s138_s29 = smov 64   ;;  %v109_v8 = vld [vmem:[%s207_s0 + $0x7] sm:$0x1]  }
   0x5   :  { %s139_s3 = smov 56   ;;  %v110_v9 = vld [vmem:[%s207_s0 + $0x6] sm:$0x1]   ;;  %v111_v10 = vld [vmem:[%s207_s0 + $0x5] sm:$0x1]   ;;  %s140_s8 = smov 48  }
   0x6   :  { %s141_s9 = smov 40   ;;  %v112_v11 = vld [vmem:[%s207_s0 + $0x4] sm:$0x1]   ;;  %s142_s12 = smov 32   ;;  %v113_v12 = vld [vmem:[%s207_s0 + $0x3] sm:$0x1]  }
   0x7   :  { %v114_v13 = vld [vmem:[%s207_s0 + $0x2] sm:$0x1]   ;;  %s143_s17 = smov 24   ;;  %s144_s18 = smov 16   ;;  %v115_v14 = vld [vmem:[%s207_s0 + $0x1] sm:$0x1]  }
   0x8   :  { %s145_s21 = smov 8   ;;  %v2_v15 = vld [vmem:[%s207_s0] sm:$0x1]   ;;  %vm27_vm4 = vcmask 851712   ;;  %vm33_vm5 = vcmask 786112   ;;  %vm39_vm6 = vcmask 720512  }
   0x9   :  { %4 = vst.msk [vmem:[#allocation0] sm:$0x1] %vm3_vm0, %v2_v15   ;;  %vm45_vm7 = vcmask 654912   ;;  %vm51_vm8 = vcmask 589312   ;;  %vm57_vm9 = vcmask 523712   ;;  %vm63_vm10 = vcmask 458112  }
   0xa   :  { %13 = vrot.lane.b32.xlu0 %v102_v3, %s134_s19  ;;  %25 = vrot.lane.b32.xlu1 %v104_v4, %s135_s20  ;;  %vm69_vm11 = vcmask 392512   ;;  %vm75_vm12 = vcmask 326912   ;;  %vm81_vm13 = vcmask 261312   ;;  %vm87_vm14 = vcmask 195712  }
   0xb   :  { %37 = vrot.lane.b32.xlu2 %v106_v5, %s136_s23  ;;  %vm93_vm15 = vcmask 130112  }
  0x12   :  { %43 = vrot.lane.b32.xlu0 %v107_v6, %s137_s28  ;;  %49 = vrot.lane.b32.xlu1 %v108_v7, %s138_s29 }
  0x13   :  { %55 = vrot.lane.b32.xlu2 %v109_v8, %s139_s3 }
  0x1a   :  { %61 = vrot.lane.b32.xlu0 %v110_v9, %s140_s8  ;;  %67 = vrot.lane.b32.xlu1 %v111_v10, %s141_s9 }
  0x1b   :  { %73 = vrot.lane.b32.xlu2 %v112_v11, %s142_s12 }
  0x22   :  { %79 = vrot.lane.b32.xlu0 %v113_v12, %s143_s17  ;;  %85 = vrot.lane.b32.xlu1 %v114_v13, %s144_s18 }
  0x23   :  { %91 = vrot.lane.b32.xlu2 %v115_v14, %s145_s21 }
  0x5d   :  { %v32_v16 = vpop.permute.xlu2 %31  }
  0x65   :  { %v38_v17 = vpop.permute.xlu2 %37  }
  0x6d   :  { %v56_v18 = vpop.permute.xlu2 %55  }
  0x74   :  { %v8_v19 = vpop.permute.xlu0 %7   ;;  %v20_v20 = vpop.permute.xlu1 %19  }
  0x75   :  { %10 = vst.msk [vmem:[#allocation0] sm:$0x1] %vm9_vm1, %v8_v19   ;;  %v74_v21 = vpop.permute.xlu2 %73  }
  0x7c   :  { %v14_v22 = vpop.permute.xlu0 %13   ;;  %v26_v23 = vpop.permute.xlu1 %25  }
  0x7d   :  { %16 = vst.msk [vmem:[#allocation0] sm:$0x1] %vm15_vm2, %v14_v22   ;;  %v92_v24 = vpop.permute.xlu2 %91  }
  0x7e   :  { %22 = vst.msk [vmem:[#allocation0] sm:$0x1] %vm21_vm3, %v20_v20  }
  0x7f   :  { %28 = vst.msk [vmem:[#allocation0] sm:$0x1] %vm27_vm4, %v26_v23  }
  0x80   :  { %34 = vst.msk [vmem:[#allocation0] sm:$0x1] %vm33_vm5, %v32_v16  }
  0x81   :  { %40 = vst.msk [vmem:[#allocation0] sm:$0x1] %vm39_vm6, %v38_v17  }
  0x84   :  { %v44_v25 = vpop.permute.xlu0 %43   ;;  %v50_v26 = vpop.permute.xlu1 %49  }
  0x85   :  { %46 = vst.msk [vmem:[#allocation0] sm:$0x1] %vm45_vm7, %v44_v25  }
  0x86   :  { %52 = vst.msk [vmem:[#allocation0] sm:$0x1] %vm51_vm8, %v50_v26  }
  0x87   :  { %58 = vst.msk [vmem:[#allocation0] sm:$0x1] %vm57_vm9, %v56_v18  }
  0x8c   :  { %v62_v27 = vpop.permute.xlu0 %61   ;;  %v68_v28 = vpop.permute.xlu1 %67  }
  0x8d   :  { %64 = vst.msk [vmem:[#allocation0] sm:$0x1] %vm63_vm10, %v62_v27  }
  0x8e   :  { %70 = vst.msk [vmem:[#allocation0] sm:$0x1] %vm69_vm11, %v68_v28  }
  0x8f   :  { %76 = vst.msk [vmem:[#allocation0] sm:$0x1] %vm75_vm12, %v74_v21  }
  0x94   :  { %v80_v29 = vpop.permute.xlu0 %79   ;;  %v86_v30 = vpop.permute.xlu1 %85  }
  0x95   :  { %82 = vst.msk [vmem:[#allocation0] sm:$0x1] %vm81_vm13, %v80_v29  }
  0x96   :  { %88 = vst.msk [vmem:[#allocation0] sm:$0x1] %vm87_vm14, %v86_v30  }
  0x97   :  { %94 = vst.msk [vmem:[#allocation0] sm:$0x1] %vm93_vm15, %v92_v24  }
  0x9e   :  { %v97_v31 = vld [vmem:[#allocation0] sm:$0x1] }
  0x9f   :  { %100 = vst [vmem:[%s208_s1] sm:$0x1] %v97_v31 }

// kernel: tile.28
= control target key start
LH: loop header
LB: loop body
LE: loop exit
PB: predicated region body
PF: predicated region fallthrough
CT: control target
= control target key end

     0   :  { %s28_s0 = inlined_call_operand.vmem [shape: f32[4], index: 0, kind: input, shape index: {}]   ;;  %s29_s1 = inlined_call_operand.vmem [shape: f32[16,4], index: 1, kind: output, shape index: {}]  }
   0x1   :  { %v4_v0 = vld [vmem:[%s28_s0] ss:$0 sm:$0xff] }
   0x2   :  { %5 = vst [vmem:[%s29_s1] sm:$0xff] %v4_v0 }
   0x3   :  { %8 = vst [vmem:[%s29_s1 + $0x8] sm:$0xff] %v4_v0 }

// kernel: tile.29
= control target key start
LH: loop header
LB: loop body
LE: loop exit
PB: predicated region body
PF: predicated region fallthrough
CT: control target
= control target key end

     0   :  { %s131_s10 = smov 60   ;;  %s132_s11 = smov 52   ;;  %vm3_vm0 = vcmask 31744   ;;  %vm9_vm1 = vcmask 523744   ;;  %vm15_vm2 = vcmask 490944   ;;  %vm21_vm3 = vcmask 458144   ;;  %s207_s0 = inlined_call_operand.vmem [shape: f32[16,4], index: 0, kind: input, shape index: {}]   ;;  %s208_s1 = inlined_call_operand.vmem [shape: f32[1,64], index: 1, kind: output, shape index: {}]  }
   0x1   :  { %v101_v0 = vld [vmem:[%s207_s0 + $0xf] sm:$0x1]   ;;  %v103_v1 = vld [vmem:[%s207_s0 + $0xd] sm:$0x1]   ;;  %v105_v2 = vld [vmem:[%s207_s0 + $0xb] sm:$0x1]  }
   0x2   :  { %7 = vrot.lane.b32.xlu0 %v101_v0, %s131_s10  ;;  %19 = vrot.lane.b32.xlu1 %v103_v1, %s132_s11  ;;  %s133_s14 = smov 44   ;;  %v102_v3 = vld [vmem:[%s207_s0 + $0xe] sm:$0x1]   ;;  %v104_v4 = vld [vmem:[%s207_s0 + $0xc] sm:$0x1]   ;;  %s134_s19 = smov 56  }
   0x3   :  { %31 = vrot.lane.b32.xlu2 %v105_v2, %s133_s14  ;;  %s135_s20 = smov 48   ;;  %v106_v5 = vld [vmem:[%s207_s0 + $0xa] sm:$0x1]   ;;  %s136_s23 = smov 40   ;;  %v107_v6 = vld [vmem:[%s207_s0 + $0x9] sm:$0x1]  }
   0x4   :  { %v108_v7 = vld [vmem:[%s207_s0 + $0x8] sm:$0x1]   ;;  %s137_s28 = smov 36   ;;  %s138_s29 = smov 32   ;;  %v109_v8 = vld [vmem:[%s207_s0 + $0x7] sm:$0x1]  }
   0x5   :  { %s139_s3 = smov 28   ;;  %v110_v9 = vld [vmem:[%s207_s0 + $0x6] sm:$0x1]   ;;  %v111_v10 = vld [vmem:[%s207_s0 + $0x5] sm:$0x1]   ;;  %s140_s8 = smov 24  }
   0x6   :  { %s141_s9 = smov 20   ;;  %v112_v11 = vld [vmem:[%s207_s0 + $0x4] sm:$0x1]   ;;  %s142_s12 = smov 16   ;;  %v113_v12 = vld [vmem:[%s207_s0 + $0x3] sm:$0x1]  }
   0x7   :  { %v114_v13 = vld [vmem:[%s207_s0 + $0x2] sm:$0x1]   ;;  %s143_s17 = smov 12   ;;  %s144_s18 = smov 8   ;;  %v115_v14 = vld [vmem:[%s207_s0 + $0x1] sm:$0x1]  }
   0x8   :  { %s145_s21 = smov 4   ;;  %v2_v15 = vld [vmem:[%s207_s0] sm:$0x1]   ;;  %vm27_vm4 = vcmask 425344   ;;  %vm33_vm5 = vcmask 392544   ;;  %vm39_vm6 = vcmask 359744  }
   0x9   :  { %4 = vst.msk [vmem:[#allocation0] sm:$0x1] %vm3_vm0, %v2_v15   ;;  %vm45_vm7 = vcmask 326944   ;;  %vm51_vm8 = vcmask 294144   ;;  %vm57_vm9 = vcmask 261344   ;;  %vm63_vm10 = vcmask 228544  }
   0xa   :  { %13 = vrot.lane.b32.xlu0 %v102_v3, %s134_s19  ;;  %25 = vrot.lane.b32.xlu1 %v104_v4, %s135_s20  ;;  %vm69_vm11 = vcmask 195744   ;;  %vm75_vm12 = vcmask 162944   ;;  %vm81_vm13 = vcmask 130144   ;;  %vm87_vm14 = vcmask 97344  }
   0xb   :  { %37 = vrot.lane.b32.xlu2 %v106_v5, %s136_s23  ;;  %vm93_vm15 = vcmask 64544  }
  0x12   :  { %43 = vrot.lane.b32.xlu0 %v107_v6, %s137_s28  ;;  %49 = vrot.lane.b32.xlu1 %v108_v7, %s138_s29 }
  0x13   :  { %55 = vrot.lane.b32.xlu2 %v109_v8, %s139_s3 }
  0x1a   :  { %61 = vrot.lane.b32.xlu0 %v110_v9, %s140_s8  ;;  %67 = vrot.lane.b32.xlu1 %v111_v10, %s141_s9 }
  0x1b   :  { %73 = vrot.lane.b32.xlu2 %v112_v11, %s142_s12 }
  0x22   :  { %79 = vrot.lane.b32.xlu0 %v113_v12, %s143_s17  ;;  %85 = vrot.lane.b32.xlu1 %v114_v13, %s144_s18 }
  0x23   :  { %91 = vrot.lane.b32.xlu2 %v115_v14, %s145_s21 }
  0x5d   :  { %v32_v16 = vpop.permute.xlu2 %31  }
  0x65   :  { %v38_v17 = vpop.permute.xlu2 %37  }
  0x6d   :  { %v56_v18 = vpop.permute.xlu2 %55  }
  0x74   :  { %v8_v19 = vpop.permute.xlu0 %7   ;;  %v20_v20 = vpop.permute.xlu1 %19  }
  0x75   :  { %10 = vst.msk [vmem:[#allocation0] sm:$0x1] %vm9_vm1, %v8_v19   ;;  %v74_v21 = vpop.permute.xlu2 %73  }
  0x7c   :  { %v14_v22 = vpop.permute.xlu0 %13   ;;  %v26_v23 = vpop.permute.xlu1 %25  }
  0x7d   :  { %16 = vst.msk [vmem:[#allocation0] sm:$0x1] %vm15_vm2, %v14_v22   ;;  %v92_v24 = vpop.permute.xlu2 %91  }
  0x7e   :  { %22 = vst.msk [vmem:[#allocation0] sm:$0x1] %vm21_vm3, %v20_v20  }
  0x7f   :  { %28 = vst.msk [vmem:[#allocation0] sm:$0x1] %vm27_vm4, %v26_v23  }
  0x80   :  { %34 = vst.msk [vmem:[#allocation0] sm:$0x1] %vm33_vm5, %v32_v16  }
  0x81   :  { %40 = vst.msk [vmem:[#allocation0] sm:$0x1] %vm39_vm6, %v38_v17  }
  0x84   :  { %v44_v25 = vpop.permute.xlu0 %43   ;;  %v50_v26 = vpop.permute.xlu1 %49  }
  0x85   :  { %46 = vst.msk [vmem:[#allocation0] sm:$0x1] %vm45_vm7, %v44_v25  }
  0x86   :  { %52 = vst.msk [vmem:[#allocation0] sm:$0x1] %vm51_vm8, %v50_v26  }
  0x87   :  { %58 = vst.msk [vmem:[#allocation0] sm:$0x1] %vm57_vm9, %v56_v18  }
  0x8c   :  { %v62_v27 = vpop.permute.xlu0 %61   ;;  %v68_v28 = vpop.permute.xlu1 %67  }
  0x8d   :  { %64 = vst.msk [vmem:[#allocation0] sm:$0x1] %vm63_vm10, %v62_v27  }
  0x8e   :  { %70 = vst.msk [vmem:[#allocation0] sm:$0x1] %vm69_vm11, %v68_v28  }
  0x8f   :  { %76 = vst.msk [vmem:[#allocation0] sm:$0x1] %vm75_vm12, %v74_v21  }
  0x94   :  { %v80_v29 = vpop.permute.xlu0 %79   ;;  %v86_v30 = vpop.permute.xlu1 %85  }
  0x95   :  { %82 = vst.msk [vmem:[#allocation0] sm:$0x1] %vm81_vm13, %v80_v29  }
  0x96   :  { %88 = vst.msk [vmem:[#allocation0] sm:$0x1] %vm87_vm14, %v86_v30  }
  0x97   :  { %94 = vst.msk [vmem:[#allocation0] sm:$0x1] %vm93_vm15, %v92_v24  }
  0x9e   :  { %v97_v31 = vld [vmem:[#allocation0] sm:$0x1] }
  0x9f   :  { %100 = vst [vmem:[%s208_s1] sm:$0x1] %v97_v31 }

// kernel: pyramid_occupancy_network.1
= control target key start
LH: loop header
LB: loop body
LE: loop exit
PB: predicated region body
PF: predicated region fallthrough
CT: control target
= control target key end

     0   :  { %15 = vsyncpa [#allocation4], 0  ;;  %s2554_s13 = smov 0   ;;  %s3001_s0 = inlined_call_operand.vmem [shape: bf16[2,16,432], index: 0, kind: input, shape index: {}]   ;;  %s3002_s1 = inlined_call_operand.vmem [shape: bf16[432,128], index: 1, kind: input, shape index: {}]   ;;  %s3003_s2 = inlined_call_operand.vmem [shape: f32[1,128], index: 2, kind: input, shape index: {}]   ;;  %s3004_s3 = inlined_call_operand.vmem [shape: bf16[128,128], index: 3, kind: input, shape index: {}]   ;;  %s3005_s4 = inlined_call_operand.vmem [shape: f32[1,128], index: 4, kind: input, shape index: {}]   ;;  %s3006_s5 = inlined_call_operand.vmem [shape: bf16[1152,128], index: 5, kind: input, shape index: {}]   ;;  %s3007_s6 = inlined_call_operand.vmem [shape: f32[1,128], index: 6, kind: input, shape index: {}]   ;;  %s3008_s7 = inlined_call_operand.vmem [shape: bf16[128,64], index: 7, kind: input, shape index: {}]   ;;  %s3009_s8 = inlined_call_operand.vmem [shape: f32[1,64], index: 8, kind: input, shape index: {}]   ;;  %s3010_s9 = inlined_call_operand.vmem [shape: f32[18], index: 9, kind: input, shape index: {}]   ;;  %s3011_s10 = inlined_call_operand.vmem [shape: f32[2,16,64], index: 10, kind: output, shape index: {}]  }
   0x1 LB: > { %s2560_s14 = sadd.s32 4294967295, %s2492_s13   ;;  %p1831_p0 = scmp.ge.s32.totalorder %s2492_s13, 1  ;;  %s2492_s13 = sphi %s2554_s13, %s21_s13  }
   0x2   : > { %p267_p1 = scmp.lt.s32.totalorder %s2492_s13, 3  ;;  %s303_s17 = sshll.u32 %s3010_s9, 4  ;;  %s304_s17 = int_to_ptr.vmem [resolvable:$true] %s303_s17 }
   0x3   : > { %p2448_p3 = scmp.eq.s32.totalorder %s2560_s14, 0  ;;  %s2494_s18 = smov [#allocation3]  }
   0x4   : > { %p268_p2 = pnand %p1831_p0, %p267_p1 }
   0x6   : > { %p2444_p4 = pneg %p268_p2  ;;  %324 = sbr.rel (%p268_p2) target bundleno = 902 (0x386), region = 60 }
   0x8   : > { %p2445_p5 = pnand %p2448_p3, %p2444_p4 }
   0xa   : > { %2447 = dma.vmem_to_smem (!%p2445_p5), %s304_s17, 16, %s2494_s18, [#allocation4]  }
   0xb   : > { %2487 = dma.done.wait (%p2448_p3), [#allocation4], 16  }
   0xc   : > { %2489 = vsyncadd (%p2448_p3), [#allocation4], 4294967280 }
   0xd   : > { %331 = sfence }
   0xe   : > { %v2332_v0 = vld [vmem:[%s3002_s1 + $0x38] sm:$0xff]  ;;  %p364_p6 = scmp.lt.s32.totalorder %s2560_s14, 1  ;;  %v2331_v3 = vld [vmem:[%s3002_s1 + $0x30] sm:$0xff]  ;;  %v2330_v7 = vld [vmem:[%s3002_s1 + $0x28] sm:$0xff]  ;;  %vm621_vm0 = vcmask 392192   ;;  %s375_s30 = smul.u32 9, %s2560_s14 }
   0xf   : > { %v2340_v1 = vld [vmem:[%s3002_s1 + $0x78] sm:$0xff]  ;;  %625 = vmatpush.bf16.msra.mxu0 %v2332_v0  ;;  %v2339_v4 = vld [vmem:[%s3002_s1 + $0x70] sm:$0xff]  ;;  %v2338_v8 = vld [vmem:[%s3002_s1 + $0x68] sm:$0xff]  ;;  %vm773_vm1 = vcmask 1043456   ;;  %vm774_vm2 = vcmask 130052   ;;  %s2496_s19 = smov 8  }
  0x10   : > { %v2348_v2 = vld [vmem:[%s3002_s1 + $0xb8] sm:$0xff]  ;;  %639 = vmatpush.bf16.msra.mxu1 %v2340_v1  ;;  %s2585_s29 = scalar_select %p364_p6, %s2560_s14, 1  ;;  %v2347_v5 = vld [vmem:[%s3002_s1 + $0xb0] sm:$0xff]  ;;  %v2346_v9 = vld [vmem:[%s3002_s1 + $0xa8] sm:$0xff]  ;;  %vm784_vm4 = vsmask.f32 256 }
  0x11   : > { %653 = vmatpush.bf16.msra.mxu2 %v2348_v2  ;;  %v2351_v6 = vld [vmem:[%s3002_s1 + $0xd0] sm:$0xff]  ;;  %v2350_v10 = vld [vmem:[%s3002_s1 + $0xc8] sm:$0xff]  ;;  %v2329_v11 = vld [vmem:[%s3002_s1 + $0x20] sm:$0xff]  ;;  %s376_s11 = sld [smem:[#allocation3 + %s375_s30]]  ;;  %vm785_vm5 = vsmask.f32 4368 }
  0x12   : > { %s2319_s16 = sshll.u32 %s2585_s29, 5  ;;  %672 = vmatpush.bf16.msra.mxu3 %v2351_v6  ;;  %v2337_v12 = vld [vmem:[%s3002_s1 + $0x60] sm:$0xff]  ;;  %v2359_v17 = vld [vmem:[%s3004_s3 + $0x38] sm:$0xff]  ;;  %v2358_v22 = vld [vmem:[%s3004_s3 + $0x30] sm:$0xff]  ;;  %vm778_vm7 = vcmask 1040384   ;;  %vm779_vm8 = vcmask 126980  }
  0x13   : > { %626 = vmatpush.bf16.msra.mxu0 %v2331_v3  ;;  %s2609_s27 = scalar_lea.vmem %s3001_s0, %s2319_s16  ;;  %v2345_v13 = vld [vmem:[%s3002_s1 + $0xa0] sm:$0xff]  ;;  %v2328_v18 = vld [vmem:[%s3002_s1 + $0x18] sm:$0xff]  ;;  %v2327_v23 = vld [vmem:[%s3002_s1 + $0x10] sm:$0xff]  ;;  %vm820_vm10 = vcmask 1043520   ;;  %vm821_vm11 = vsmask.f32 7938 }
  0x14   : > { %640 = vmatpush.bf16.msra.mxu1 %v2339_v4  ;;  %v2349_v14 = vld [vmem:[%s3002_s1 + $0xc0] sm:$0xff]  ;;  %v2322_v15 = vld [vmem:[%s2609_s27 + $0xc] sm:$0xf]  ;;  %v1852_v16 = vld [vmem:[%s2609_s27 + $0x18] sm:$0xf0]  ;;  %vm823_vm12 = vcmask 64516  }
  0x15   : > { %654 = vmatpush.bf16.msra.mxu2 %v2347_v5  ;;  %v2336_v19 = vld [vmem:[%s3002_s1 + $0x58] sm:$0xff]  ;;  %v1855_v21 = vor.u32 %v2322_v15, %v1852_v16  ;;  %v2335_v24 = vld [vmem:[%s3002_s1 + $0x50] sm:$0xff]  ;;  %v2326_v26 = vld [vmem:[%s3002_s1 + $0x8] sm:$0xff]  ;;  %v2495_v5 = vmov 0   ;;  %vm824_vm13 = vsmask.f32 7954 }
  0x16   : > { %673 = vmatpush.bf16.msra.mxu3 %v2350_v10  ;;  %v2344_v20 = vld [vmem:[%s3002_s1 + $0x98] sm:$0xff]  ;;  %v2343_v25 = vld [vmem:[%s3002_s1 + $0x90] sm:$0xff]  ;;  %v2334_v27 = vld [vmem:[%s3002_s1 + $0x48] sm:$0xff]  ;;  %s2497_s12 = smov 120   ;;  %s2498_s15 = smov 112  }
  0x17   : > { %627 = vmatpush.bf16.msra.mxu0 %v2330_v7  ;;  %v2342_v28 = vld [vmem:[%s3002_s1 + $0x88] sm:$0xff]  ;;  %v2325_v29 = vld [vmem:[%s3002_s1] sm:$0xff]  ;;  %v2323_v32 = vld [vmem:[%s2609_s27 + $0xc] sm:$0xf0]  ;;  %s377_s17 = smul.f32 0.00390625, %s376_s11  ;;  %s2320_s20 = sshll.u32 %s2585_s29, 4 }
  0x18   : > { %641 = vmatpush.bf16.msra.mxu1 %v2338_v8  ;;  %v2333_v30 = vld [vmem:[%s3002_s1 + $0x40] sm:$0xff]  ;;  %v1844_v34 = vld [vmem:[%s2609_s27 + $0x10] sm:$0xf0]  ;;  %v1850_v36 = vld [vmem:[%s2609_s27 + $0x8] sm:$0xf]  ;;  %s373_s25 = scalar_lea.vmem %s3011_s10, %s2320_s20 }
  0x19   : > { %655 = vmatpush.bf16.msra.mxu2 %v2346_v9  ;;  %v1842_v31 = vld [vmem:[%s2609_s27] sm:$0xf]  ;;  %v2321_v33 = vld [vmem:[%s2609_s27 + $0x4] sm:$0xf]  ;;  %v2324_v37 = vld [vmem:[%s2609_s27 + $0x14] sm:$0xf0]  ;;  %v762_v6 = vstv %s377_s17 }
  0x1a   : > { %674 = vmatpush.bf16.msra.mxu3 %v2349_v14  ;;  %v2341_v35 = vld [vmem:[%s3002_s1 + $0x80] sm:$0xff]  ;;  %v1843_v38 = vor.u32 %v2323_v32, %v1842_v31  ;;  %v1847_v39 = vor.u32 %v2321_v33, %v1844_v34  ;;  %v1851_v40 = vor.u32 %v2324_v37, %v1850_v36  ;;  %v2357_v41 = vld [vmem:[%s3004_s3 + $0x28] sm:$0xff]  ;;  %v2355_v43 = vld [vmem:[%s3004_s3 + $0x18] sm:$0xff] }
  0x1b   : > { %628 = vmatpush.bf16.msra.mxu0 %v2329_v11  ;;  %v2356_v42 = vld [vmem:[%s3004_s3 + $0x20] sm:$0xff]  ;;  %v2354_v44 = vld [vmem:[%s3004_s3 + $0x10] sm:$0xff]  ;;  %v2353_v45 = vld [vmem:[%s3004_s3 + $0x8] sm:$0xff] }
  0x1c   : > { %642 = vmatpush.bf16.msra.mxu1 %v2337_v12  ;;  %v2352_v46 = vld [vmem:[%s3004_s3] sm:$0xff]  ;;  %v2367_v3 = vld [vmem:[%s3006_s5 + $0x38] sm:$0xff]  ;;  %vm775_vm3 = vmor %vm774_vm2, %vm773_vm1  ;;  %vm834_vm2 = vcmask 1040448  }
  0x1d   : > { %656 = vmatpush.bf16.msra.mxu2 %v2345_v13  ;;  %1964 = vmatmul.msk.bf16.vlgmr.msra.gmra.mxu3 %vm621_vm0, %v1855_v21  ;;  %v2463_v47 = vld [vmem:[%s3003_s2] ss:$0 sm:$0xff]  ;;  %v2366_v4 = vld [vmem:[%s3006_s5 + $0x30] sm:$0xff]  ;;  %776 = vst.msk [vmem:[#allocation2] sm:$0xff] %vm775_vm3, %v2495_v5  ;;  %vm786_vm6 = vmor %vm784_vm4, %vm785_vm5  ;;  %vm813_vm0 = vcmask 64512  }
  0x1e   : > { %748 = vmatpush.bf16.msrb.mxu3 %v2359_v17  ;;  %777 = vst.msk [vmem:[#allocation2 + $0x8] sm:$0xff] %vm775_vm3, %v2495_v5  ;;  %v2464_v7 = vld [vmem:[%s3005_s4] ss:$0 sm:$0xff]  ;;  %v2390_v31 = vld [vmem:[%s3006_s5 + $0xf0] sm:$0xff]  ;;  %vm780_vm9 = vmor %vm779_vm8, %vm778_vm7  ;;  %vm836_vm3 = vcmask 61444  }
  0x1f   : > { %629 = vmatpush.bf16.msra.mxu0 %v2328_v18  ;;  %v2364_v32 = vld [vmem:[%s3006_s5 + $0x20] sm:$0xff]  ;;  %781 = vst.msk [vmem:[#allocation2 + $0x10] sm:$0x11] %vm780_vm9, %v2495_v5  ;;  %v2389_v33 = vld [vmem:[%s3006_s5 + $0xe8] sm:$0xff]  ;;  %v2363_v34 = vld [vmem:[%s3006_s5 + $0x18] sm:$0xff] }
  0x20   : > { %643 = vmatpush.bf16.msra.mxu1 %v2336_v19  ;;  %v2362_v36 = vld [vmem:[%s3006_s5 + $0x10] sm:$0xff]  ;;  %v2387_v37 = vld [vmem:[%s3006_s5 + $0xd8] sm:$0xff]  ;;  %vm822_vm14 = vmand %vm820_vm10, %vm821_vm11  ;;  %vm837_vm5 = vsmask.f32 4352  ;;  %vm869_vm11 = vcmask 982016  }
  0x21   : > { %657 = vmatpush.bf16.msra.mxu2 %v2344_v20  ;;  %vm825_vm15 = vmand %vm823_vm12, %vm824_vm13  ;;  %vm1759_vm13 = vcmask 523264  }
  0x22   : > { %749 = vmatpush.bf16.msrb.mxu3 %v2358_v22  ;;  %vm826_vm1 = vmor %vm825_vm15, %vm822_vm14 }
  0x23   : > { %630 = vmatpush.bf16.msra.mxu0 %v2327_v23  ;;  %vm838_vm7 = vmand %vm836_vm3, %vm837_vm5 }
  0x24   : > { %644 = vmatpush.bf16.msra.mxu1 %v2335_v24  ;;  %vm832_vm9 = vmor %vm823_vm12, %vm820_vm10  ;;  %vm940_vm10 = vcmask 1046528   ;;  %vm876_vm12 = vcmask 916480  }
  0x25   : > { %658 = vmatpush.bf16.msra.mxu2 %v2343_v25 }
  0x26   : > { %750 = vmatpush.bf16.msrb.mxu3 %v2357_v41  ;;  %v2385_v41 = vld [vmem:[%s3006_s5 + $0xc8] sm:$0xff] }
  0x27   : > { %631 = vmatpush.bf16.msra.mxu0 %v2326_v26 }
  0x28   : > { %645 = vmatpush.bf16.msra.mxu1 %v2334_v27 }
  0x29   : > { %659 = vmatpush.bf16.msra.mxu2 %v2342_v28 }
  0x2a   : > { %751 = vmatpush.bf16.msrb.mxu3 %v2356_v42  ;;  %v2384_v42 = vld [vmem:[%s3006_s5 + $0xc0] sm:$0xff] }
  0x2b   : > { %632 = vmatpush.bf16.msra.mxu0 %v2325_v29  ;;  %v2391_v29 = vld [vmem:[%s3006_s5 + $0xf8] sm:$0xff] }
  0x2c   : > { %646 = vmatpush.bf16.msra.mxu1 %v2333_v30  ;;  %v2365_v30 = vld [vmem:[%s3006_s5 + $0x28] sm:$0xff] }
  0x2d   : > { %660 = vmatpush.bf16.msra.mxu2 %v2341_v35  ;;  %v2388_v35 = vld [vmem:[%s3006_s5 + $0xe0] sm:$0xff] }
  0x2e   : > { %633 = vmatmul.bf16.vlgmr.msra.gmra.mxu0 %v1843_v38  ;;  %752 = vmatpush.bf16.msrb.mxu3 %v2355_v43  ;;  %v2361_v38 = vld [vmem:[%s3006_s5 + $0x8] sm:$0xff] }
  0x2f   : > { %647 = vmatmul.bf16.vlgmr.msra.gmra.mxu1 %v1847_v39  ;;  %1548 = vmatpush.bf16.msrb.mxu0 %v2367_v3  ;;  %v2386_v39 = vld [vmem:[%s3006_s5 + $0xd0] sm:$0xff] }
  0x30   : > { %661 = vmatmul.bf16.vlgmr.msra.gmra.mxu2 %v1851_v40  ;;  %v2360_v40 = vld [vmem:[%s3006_s5] sm:$0xff] }
  0x32   : > { %753 = vmatpush.bf16.msrb.mxu3 %v2354_v44  ;;  %v827_v44 = vld [vmem:[#allocation2] sm:$0xff] }
  0x33   : > { %1549 = vmatpush.bf16.msrb.mxu0 %v2366_v4 }
  0x36   : > { %754 = vmatpush.bf16.msrb.mxu3 %v2353_v45 }
  0x37   : > { %1550 = vmatpush.bf16.msrb.mxu0 %v2365_v30 }
  0x3a   : > { %755 = vmatpush.bf16.msrb.mxu3 %v2352_v46 }
  0x3b   : > { %1551 = vmatpush.bf16.msrb.mxu0 %v2364_v32  ;;  %v2399_v32 = vld [vmem:[%s3006_s5 + $0x138] sm:$0xff] }
  0x3e   : > { %1590 = vmatpush.bf16.msra.mxu3 %v2391_v29 }
  0x3f   : > { %1552 = vmatpush.bf16.msrb.mxu0 %v2363_v34 }
  0x42   : > { %1591 = vmatpush.bf16.msra.mxu3 %v2390_v31 }
  0x43   : > { %1553 = vmatpush.bf16.msrb.mxu0 %v2362_v36 }
  0x46   : > { %1592 = vmatpush.bf16.msra.mxu3 %v2389_v33 }
  0x47   : > { %1554 = vmatpush.bf16.msrb.mxu0 %v2361_v38 }
  0x4a   : > { %1593 = vmatpush.bf16.msra.mxu3 %v2388_v35 }
  0x4b   : > { %1555 = vmatpush.bf16.msrb.mxu0 %v2360_v40 }
  0x4e   : > { %1594 = vmatpush.bf16.msra.mxu3 %v2387_v37 }
  0x4f   : > { %1604 = vmatpush.bf16.msra.mxu0 %v2399_v32  ;;  %v2401_v32 = vld [vmem:[%s3006_s5 + $0x148] sm:$0xff] }
  0x52   : > { %1595 = vmatpush.bf16.msra.mxu3 %v2386_v39  ;;  %v2398_v39 = vld [vmem:[%s3006_s5 + $0x130] sm:$0xff] }
  0x53   : > { %1605 = vmatpush.bf16.msra.mxu0 %v2398_v39  ;;  %v2426_v39 = vld [vmem:[%s3006_s5 + $0x210] sm:$0xff] }
  0x56   : > { %1596 = vmatpush.bf16.msra.mxu3 %v2385_v41 }
  0x5a   : > { %1597 = vmatpush.bf16.msra.mxu3 %v2384_v42 }
  0xa0   : > { %v676_v51 = vpop.f32.mrf.mxu3 }
  0xa8   : > { %v678_v62 = vpop.f32.mrf.mxu3 }
  0xab   : > { %v634_v48 = vpop.f32.mrf.mxu0 }
  0xac   : > { %v648_v49 = vpop.f32.mrf.mxu1  ;;  %v635_v50 = vadd.f32 %v2463_v47, %v634_v48 }
  0xae   : > { %v649_v53 = vadd.f32 %v648_v49, %v635_v50  ;;  %v840_v49 = vld [vmem:[#allocation2 + $0x10] sm:$0x11] }
  0xb3   : > { %v662_v52 = vpop.f32.mrf.mxu2  ;;  %v636_v54 = vpop.f32.mrf.mxu0 }
  0xb4   : > { %v637_v55 = vadd.f32 %v2463_v47, %v636_v54  ;;  %v663_v56 = vadd.f32 %v662_v52, %v649_v53  ;;  %v650_v57 = vpop.f32.mrf.mxu1 }
  0xb6   : > { %v651_v58 = vadd.f32 %v650_v57, %v637_v55  ;;  %v677_v60 = vadd.f32 %v676_v51, %v663_v56 }
  0xb8   : > { %v681_v0 = vmax.f32 %v677_v60, 0.0 }
  0xbb   : > { %v664_v59 = vpop.f32.mrf.mxu2 }
  0xbc   : > { %v665_v61 = vadd.f32 %v664_v59, %v651_v58 }
  0xbe   : > { %v679_v63 = vadd.f32 %v678_v62, %v665_v61 }
  0xc0   : > { %v682_v1 = vmax.f32 %v679_v63, 0.0 }
  0xc2   : > { %v683_v2 = vpack.c.bf16 %v682_v1, %v681_v0 }
  0xc4   : > { %756 = vmatmul.bf16.vlgmr.msrb.gmra.mxu3 %v683_v2 }
 0x147   : > { %v757_v8 = vpop.f32.mrf.mxu3 }
 0x148   : > { %v763_v9 = vmul.f32 %v762_v6, %v757_v8 }
 0x14a   : > { %v769_v10 = vadd.f32 %v2464_v7, %v763_v9 }
 0x14c   : > { %v771_v11 = vmax.f32 %v769_v10, 0.0 }
 0x14e   : > { %v782_v12 = vpack.c.bf16 %v771_v11, %v771_v11 }
 0x14f   : > { %v759_v13 = vpop.f32.mrf.mxu3 }
 0x150   : > { %v764_v14 = vmul.f32 %v762_v6, %v759_v13  ;;  %v788_v15 = vshrl.u32 %v782_v12, 16  ;;  %v791_v18 = vshll.u32 %v782_v12, 16 }
 0x152   : > { %v770_v16 = vadd.f32 %v2464_v7, %v764_v14  ;;  %v790_v17 = vrot.slane %v788_v15, 7 }
 0x154   : > { %v772_v19 = vmax.f32 %v770_v16, 0.0  ;;  %v793_v20 = vor.u32 %v791_v18, %v790_v17  ;;  %v794_v25 = vrot.slane %v790_v17, 4 }
 0x156   : > { %v783_v21 = vpack.c.bf16 %v772_v19, %v772_v19  ;;  %804 = vrot.lane.b32.xlu0 %v793_v20, %s2496_s19  ;;  %v2375_v20 = vld [vmem:[%s3006_s5 + $0x78] sm:$0xff] }
 0x157   : > { %1562 = vmatpush.bf16.msrb.mxu1 %v2375_v20  ;;  %v2404_v20 = vld [vmem:[%s3006_s5 + $0x160] sm:$0xff] }
 0x158   : > { %v796_v22 = vshrl.u32 %v783_v21, 16  ;;  %v799_v23 = vshll.u32 %v783_v21, 16  ;;  %v2383_v21 = vld [vmem:[%s3006_s5 + $0xb8] sm:$0xff] }
 0x159   : > { %1576 = vmatpush.bf16.msrb.mxu2 %v2383_v21  ;;  %v2412_v21 = vld [vmem:[%s3006_s5 + $0x1a0] sm:$0xff] }
 0x15a   : > { %v798_v24 = vrot.slane %v796_v22, 7 }
 0x15c   : > { %v803_v26 = vrot.slane %v798_v24, 4  ;;  %v801_v27 = vor.u32 %v799_v23, %v798_v24 }
 0x15e   : > { %808 = vrot.lane.b32.xlu1 %v803_v26, %s2496_s19  ;;  %v802_v28 = vsel %vm786_vm6, %v794_v25, %v801_v27  ;;  %vm835_vm6 = vmand %vm834_vm2, %vm784_vm4  ;;  %vm882_vm4 = vsmask.f32 7424  ;;  %v2374_v27 = vld [vmem:[%s3006_s5 + $0x70] sm:$0xff] }
 0x15f   : > { %806 = vrot.lane.b32.xlu0 %v802_v28, %s2496_s19  ;;  %vm839_vm8 = vmor %vm838_vm7, %vm835_vm6  ;;  %v2382_v28 = vld [vmem:[%s3006_s5 + $0xb0] sm:$0xff]  ;;  %1563 = vmatpush.bf16.msrb.mxu1 %v2374_v27  ;;  %v2429_v27 = vld [vmem:[%s3006_s5 + $0x228] sm:$0xff] }
 0x160   : > { %1577 = vmatpush.bf16.msrb.mxu2 %v2382_v28  ;;  %v2402_v28 = vld [vmem:[%s3006_s5 + $0x150] sm:$0xff] }
 0x1c8   : > { %v805_v43 = vpop.permute.xlu0 %804 }
 0x1c9   : > { %v810_v45 = vrot.slane %v805_v43, 4 }
 0x1cb   : > { %v814_v46 = vsel %vm813_vm0, %v810_v45, %v805_v43  ;;  %v2381_v45 = vld [vmem:[%s3006_s5 + $0xa8] sm:$0xff] }
 0x1cc   : > { %v828_v47 = vsel %vm826_vm1, %v814_v46, %v827_v44  ;;  %v2373_v44 = vld [vmem:[%s3006_s5 + $0x68] sm:$0xff]  ;;  %1578 = vmatpush.bf16.msrb.mxu2 %v2381_v45 }
 0x1cd   : > { %829 = vst [vmem:[#allocation2] sm:$0xff] %v828_v47  ;;  %v860_v62 = vunpack.c.h.b16 %v828_v47  ;;  %v859_v63 = vunpack.c.l.b16 %v828_v47  ;;  %1564 = vmatpush.bf16.msrb.mxu1 %v2373_v44 }
 0x1d0   : > { %v809_v48 = vpop.permute.xlu1 %808 }
 0x1d1   : > { %v812_v50 = vrot.slane %v809_v48, 4  ;;  %v807_v51 = vpop.permute.xlu0 %806 }
 0x1d2   : > { %v811_v52 = vrot.slane %v807_v51, 4 }
 0x1d3   : > { %v816_v53 = vsel %vm813_vm0, %v812_v50, %v809_v48 }
 0x1d4   : > { %v841_v54 = vsel %vm839_vm8, %v816_v53, %v840_v49  ;;  %v815_v55 = vsel %vm813_vm0, %v811_v52, %v807_v51  ;;  %v843_v56 = vld [vmem:[#allocation2] sm:$0xf]  ;;  %v2397_v52 = vld [vmem:[%s3006_s5 + $0x128] sm:$0xff] }
 0x1d5   : > { %842 = vst [vmem:[#allocation2 + $0x10] sm:$0x11] %v841_v54  ;;  %v849_v57 = vld [vmem:[#allocation2] sm:$0xe]  ;;  %v853_v5 = vunpack.c.l.b16 %v843_v56  ;;  %1606 = vmatpush.bf16.msra.mxu0 %v2397_v52 }
 0x1d6   : > { %833 = vst.msk [vmem:[#allocation2 + $0x8] sm:$0xff] %vm832_vm9, %v815_v55  ;;  %v2755_v60 = vld [vmem:[#allocation2] sm:$0xee]  ;;  %v938_v7 = vunpack.c.l.b16 %v849_v57 }
 0x1d7   : > { %v946_v10 = vunpack.c.l.b16 %v2755_v60  ;;  %v947_v43 = vunpack.c.h.b16 %v2755_v60  ;;  %v2372_v53 = vld [vmem:[%s3006_s5 + $0x60] sm:$0xff]  ;;  %v2379_v60 = vld [vmem:[%s3006_s5 + $0x98] sm:$0xff] }
 0x1d8   : > { %v2380_v54 = vld [vmem:[%s3006_s5 + $0xa0] sm:$0xff]  ;;  %1565 = vmatpush.bf16.msrb.mxu1 %v2372_v53 }
 0x1d9   : > { %1579 = vmatpush.bf16.msrb.mxu2 %v2380_v54 }
 0x1dc   : > { %v847_v58 = vld [vmem:[#allocation2 + $0x10] sm:$0x1] }
 0x1dd   : > { %v848_v59 = vld [vmem:[#allocation2 + $0x10] sm:$0x11]  ;;  %v2757_v61 = vld [vmem:[#allocation2 + $0x8] sm:$0xff]  ;;  %v880_v1 = vunpack.c.l.b16 %v847_v58  ;;  %1580 = vmatpush.bf16.msrb.mxu2 %v2379_v60 }
 0x1de   : > { %v844_v0 = vld [vmem:[#allocation2 + $0x8] sm:$0xf]  ;;  %v897_v2 = vunpack.c.l.b16 %v848_v59  ;;  %v862_v3 = vunpack.c.h.b16 %v2757_v61  ;;  %v861_v4 = vunpack.c.l.b16 %v2757_v61  ;;  %v898_v22 = vunpack.c.h.b16 %v848_v59  ;;  %v2371_v59 = vld [vmem:[%s3006_s5 + $0x58] sm:$0xff] }
 0x1df   : > { %v854_v6 = vunpack.c.l.b16 %v844_v0  ;;  %v881_v8 = vpack.c.b16 %v880_v1, %v880_v1  ;;  %1566 = vmatpush.bf16.msrb.mxu1 %v2371_v59  ;;  %v2378_v0 = vld [vmem:[%s3006_s5 + $0x90] sm:$0xff]  ;;  %v2396_v1 = vld [vmem:[%s3006_s5 + $0x120] sm:$0xff] }
 0x1e0   : > { %v899_v9 = vpack.c.b16 %v897_v2, %v897_v2  ;;  %v2762_v11 = vpack.c.b16 %v862_v3, %v860_v62  ;;  %v863_v12 = vpack.c.b16 %v861_v4, %v859_v63  ;;  %v948_v15 = vpack.c.b16 %v861_v4, %v946_v10  ;;  %v2370_v63 = vld [vmem:[%s3006_s5 + $0x50] sm:$0xff]  ;;  %v2369_v2 = vld [vmem:[%s3006_s5 + $0x48] sm:$0xff]  ;;  %1607 = vmatpush.bf16.msra.mxu0 %v2396_v1  ;;  %v2395_v4 = vld [vmem:[%s3006_s5 + $0x118] sm:$0xff] }
 0x1e1   : > { %v855_v13 = vpack.c.b16 %v854_v6, %v853_v5  ;;  %v939_v14 = vpack.c.b16 %v854_v6, %v938_v7  ;;  %v891_v17 = vshll.u32 %v881_v8, 16  ;;  %v900_v38 = vpack.c.b16 %v898_v22, %v898_v22  ;;  %1581 = vmatpush.bf16.msrb.mxu2 %v2378_v0  ;;  %v2368_v5 = vld [vmem:[%s3006_s5 + $0x40] sm:$0xff]  ;;  %v2394_v7 = vld [vmem:[%s3006_s5 + $0x110] sm:$0xff]  ;;  %v2423_v10 = vld [vmem:[%s3006_s5 + $0x1f8] sm:$0xff] }
 0x1e2   : > { %867 = vrot.lane.b32.xlu0 %v2762_v11, %s2497_s12  ;;  %874 = vrot.lane.b32.xlu2 %v2762_v11, %s2498_s15  ;;  %v904_v18 = vshll.u32 %v863_v12, 16  ;;  %v909_v19 = vshll.u32 %v899_v9, 16  ;;  %v902_v25 = vshrl.u32 %v863_v12, 16  ;;  %v950_v29 = vrot.slane %v948_v15, 1  ;;  %v2376_v6 = vld [vmem:[%s3006_s5 + $0x80] sm:$0xff]  ;;  %v2435_v1 = vld [vmem:[%s3008_s7 + $0x18] sm:$0xff] }
 0x1e3   : > { %v886_v16 = vshll.u32 %v855_v13, 16  ;;  %872 = vrot.lane.b32.xlu1 %v863_v12, %s2498_s15  ;;  %1556 = vmatmul.bf16.vlgmr.msrb.gmra.mxu0 %v855_v13  ;;  %v884_v23 = vshrl.u32 %v855_v13, 16  ;;  %v951_v30 = vrot.slane %v899_v9, 1  ;;  %v916_v31 = vshll.u32 %v2762_v11, 16  ;;  %v2415_v9 = vld [vmem:[%s3006_s5 + $0x1b8] sm:$0xff]  ;;  %v2414_v13 = vld [vmem:[%s3006_s5 + $0x1b0] sm:$0xff] }
 0x1e4   : > { %v906_v26 = vrot.slane %v904_v18, 1  ;;  %v941_v33 = vrot.slane %v939_v14, 1  ;;  %v893_v35 = vrot.slane %v891_v17, 1  ;;  %v911_v37 = vrot.slane %v909_v19, 1  ;;  %1567 = vmatpush.bf16.msrb.mxu1 %v2370_v63  ;;  %1608 = vmatpush.bf16.msra.mxu0 %v2395_v4  ;;  %v2422_v14 = vld [vmem:[%s3006_s5 + $0x1f0] sm:$0xff]  ;;  %v2392_v15 = vld [vmem:[%s3006_s5 + $0x100] sm:$0xff] }
 0x1e5   : > { %v888_v24 = vrot.slane %v886_v16, 1  ;;  %v942_v40 = vrot.slane %v881_v8, 1  ;;  %v952_v46 = vsel %vm940_vm10, %v950_v29, %v951_v30  ;;  %v918_v47 = vrot.slane %v916_v31, 1  ;;  %v2407_v8 = vld [vmem:[%s3006_s5 + $0x178] sm:$0xff]  ;;  %1646 = vmatpush.bf16.msrb.mxu3 %v2423_v10  ;;  %v2405_v16 = vld [vmem:[%s3006_s5 + $0x168] sm:$0xff]  ;;  %v2420_v22 = vld [vmem:[%s3006_s5 + $0x1e0] sm:$0xff] }
 0x1e6   : > { %v907_v36 = vor.u32 %v906_v26, %v902_v25  ;;  %v949_v49 = vpack.c.b16 %v862_v3, %v947_v43  ;;  %v914_v50 = vshrl.u32 %v2762_v11, 16  ;;  %v921_v51 = vshll.u32 %v900_v38, 16  ;;  %v2377_v3 = vld [vmem:[%s3006_s5 + $0x88] sm:$0xff]  ;;  %v2431_v19 = vld [vmem:[%s3006_s5 + $0x238] sm:$0xff]  ;;  %v2410_v29 = vld [vmem:[%s3006_s5 + $0x190] sm:$0xff] }
 0x1e7   : > { %v889_v34 = vor.u32 %v888_v24, %v884_v23  ;;  %v2799_v48 = vsel %vm940_vm10, %v941_v33, %v942_v40  ;;  %v954_v57 = vrot.slane %v900_v38, 1  ;;  %1582 = vmatpush.bf16.msrb.mxu2 %v2377_v3  ;;  %v2393_v11 = vld [vmem:[%s3006_s5 + $0x108] sm:$0xff]  ;;  %v2430_v23 = vld [vmem:[%s3006_s5 + $0x230] sm:$0xff]  ;;  %v2403_v24 = vld [vmem:[%s3006_s5 + $0x158] sm:$0xff] }
 0x1e8   : > { %v912_v42 = vsel %vm882_vm4, %v907_v36, %v911_v37  ;;  %v919_v55 = vor.u32 %v918_v47, %v914_v50  ;;  %v953_v56 = vrot.slane %v949_v49, 1  ;;  %v923_v58 = vrot.slane %v921_v51, 1  ;;  %1568 = vmatpush.bf16.msrb.mxu1 %v2369_v2  ;;  %1609 = vmatpush.bf16.msra.mxu0 %v2394_v7  ;;  %v2413_v17 = vld [vmem:[%s3006_s5 + $0x1a8] sm:$0xff]  ;;  %v2411_v25 = vld [vmem:[%s3006_s5 + $0x198] sm:$0xff]  ;;  %v2418_v30 = vld [vmem:[%s3006_s5 + $0x1d0] sm:$0xff] }
 0x1e9   : > { %v894_v41 = vsel %vm882_vm4, %v889_v34, %v893_v35  ;;  %1647 = vmatpush.bf16.msrb.mxu3 %v2422_v14  ;;  %v2421_v18 = vld [vmem:[%s3006_s5 + $0x1e8] sm:$0xff]  ;;  %v2419_v26 = vld [vmem:[%s3006_s5 + $0x1d8] sm:$0xff]  ;;  %v2428_v31 = vld [vmem:[%s3006_s5 + $0x220] sm:$0xff] }
 0x1ea   : > { %1598 = vmatmul.bf16.vlgmr.msra.gmra.mxu3 %v894_v41  ;;  %956 = vrot.lane.b32.xlu0 %v952_v46, %s2497_s12  ;;  %v924_v61 = vsel %vm882_vm4, %v919_v55, %v923_v58  ;;  %v955_v62 = vsel %vm940_vm10, %v953_v56, %v954_v57  ;;  %v2409_v33 = vld [vmem:[%s3006_s5 + $0x188] sm:$0xff]  ;;  %v2427_v35 = vld [vmem:[%s3006_s5 + $0x218] sm:$0xff]  ;;  %v2400_v36 = vld [vmem:[%s3006_s5 + $0x140] sm:$0xff] }
 0x1eb   : > { %865 = vrot.lane.b32.xlu2 %v863_v12, %s2497_s12  ;;  %925 = vrot.lane.b32.xlu1 %v912_v42, %s2497_s12  ;;  %v2406_v12 = vld [vmem:[%s3006_s5 + $0x170] sm:$0xff]  ;;  %v2417_v34 = vld [vmem:[%s3006_s5 + $0x1c8] sm:$0xff] }
 0x1ec   : > { %1569 = vmatpush.bf16.msrb.mxu1 %v2368_v5  ;;  %1583 = vmatpush.bf16.msrb.mxu2 %v2376_v6  ;;  %v2408_v37 = vld [vmem:[%s3006_s5 + $0x180] sm:$0xff]  ;;  %v2425_v41 = vld [vmem:[%s3006_s5 + $0x208] sm:$0xff]  ;;  %v2434_v4 = vld [vmem:[%s3008_s7 + $0x10] sm:$0xff] }
 0x1ed   : > { %1610 = vmatpush.bf16.msra.mxu0 %v2393_v11  ;;  %1648 = vmatpush.bf16.msrb.mxu3 %v2421_v18  ;;  %v2416_v38 = vld [vmem:[%s3006_s5 + $0x1c0] sm:$0xff]  ;;  %v2433_v6 = vld [vmem:[%s3008_s7 + $0x8] sm:$0xff] }
 0x1ee   : > { %v2436_v0 = vld [vmem:[%s3008_s7 + $0x20] sm:$0xff] }
 0x1ef   : > { %v2465_v7 = vld [vmem:[%s3007_s6] ss:$0 sm:$0xff] }
 0x1f0   : > { %1618 = vmatpush.bf16.msra.mxu1 %v2407_v8  ;;  %1632 = vmatpush.bf16.msra.mxu2 %v2415_v9  ;;  %v2432_v10 = vld [vmem:[%s3008_s7] sm:$0xff] }
 0x1f1   : > { %1611 = vmatpush.bf16.msra.mxu0 %v2392_v15  ;;  %1649 = vmatpush.bf16.msrb.mxu3 %v2420_v22 }
 0x1f2   : > { %933 = vrot.lane.b32.xlu0 %v924_v61, %s2498_s15 }
 0x1f3   : > { %927 = vrot.lane.b32.xlu2 %v924_v61, %s2497_s12  ;;  %958 = vrot.lane.b32.xlu1 %v955_v62, %s2497_s12  ;;  %v2439_v61 = vld [vmem:[%s3008_s7 + $0x38] sm:$0xff] }
 0x1f4   : > { %1619 = vmatpush.bf16.msra.mxu1 %v2406_v12  ;;  %1633 = vmatpush.bf16.msra.mxu2 %v2414_v13 }
 0x1f5   : > { %1660 = vmatpush.bf16.msrb.mxu0 %v2431_v19  ;;  %1650 = vmatpush.bf16.msrb.mxu3 %v2419_v26 }
 0x1f8   : > { %1620 = vmatpush.bf16.msra.mxu1 %v2405_v16  ;;  %1634 = vmatpush.bf16.msra.mxu2 %v2413_v17 }
 0x1f9   : > { %1661 = vmatpush.bf16.msrb.mxu0 %v2430_v23  ;;  %1651 = vmatpush.bf16.msrb.mxu3 %v2418_v30 }
 0x1fb   : > { %931 = vrot.lane.b32.xlu2 %v912_v42, %s2498_s15  ;;  %962 = vrot.lane.b32.xlu1 %v952_v46, %s2498_s15  ;;  %v2424_v42 = vld [vmem:[%s3006_s5 + $0x200] sm:$0xff] }
 0x1fc   : > { %1621 = vmatpush.bf16.msra.mxu1 %v2404_v20  ;;  %1635 = vmatpush.bf16.msra.mxu2 %v2412_v21 }
 0x1fd   : > { %1662 = vmatpush.bf16.msrb.mxu0 %v2429_v27  ;;  %1652 = vmatpush.bf16.msrb.mxu3 %v2417_v34 }
 0x200   : > { %1622 = vmatpush.bf16.msra.mxu1 %v2403_v24  ;;  %1636 = vmatpush.bf16.msra.mxu2 %v2411_v25 }
 0x201   : > { %1663 = vmatpush.bf16.msrb.mxu0 %v2428_v31  ;;  %1653 = vmatpush.bf16.msrb.mxu3 %v2416_v38 }
 0x203   : > { %964 = vrot.lane.b32.xlu2 %v955_v62, %s2498_s15  ;;  %v2438_v62 = vld [vmem:[%s3008_s7 + $0x30] sm:$0xff] }
 0x204   : > { %1623 = vmatpush.bf16.msra.mxu1 %v2402_v28  ;;  %1637 = vmatpush.bf16.msra.mxu2 %v2410_v29 }
 0x205   : > { %1664 = vmatpush.bf16.msrb.mxu0 %v2427_v35 }
 0x208   : > { %1624 = vmatpush.bf16.msra.mxu1 %v2401_v32  ;;  %1638 = vmatpush.bf16.msra.mxu2 %v2409_v33 }
 0x209   : > { %1665 = vmatpush.bf16.msrb.mxu0 %v2426_v39 }
 0x20c   : > { %1625 = vmatpush.bf16.msra.mxu1 %v2400_v36  ;;  %1639 = vmatpush.bf16.msra.mxu2 %v2408_v37 }
 0x20d   : > { %1666 = vmatpush.bf16.msrb.mxu0 %v2425_v41 }
 0x211   : > { %1667 = vmatpush.bf16.msrb.mxu0 %v2424_v42 }
 0x23c   : > { %v875_v40 = vpop.permute.xlu2 %874 }
 0x245   : > { %v866_v43 = vpop.permute.xlu2 %865 }
 0x24d   : > { %v928_v49 = vpop.permute.xlu2 %927 }
 0x254   : > { %v868_v44 = vpop.permute.xlu0 %867 }
 0x255   : > { %v873_v45 = vpop.permute.xlu1 %872  ;;  %v870_v46 = vsel %vm869_vm11, %v866_v43, %v868_v44  ;;  %v932_v53 = vpop.permute.xlu2 %931  ;;  %v2466_v44 = vld [vmem:[%s3009_s8] ss:$0 sm:$0xff] }
 0x256   : > { %1570 = vmatmul.bf16.vlgmr.msrb.gmra.mxu1 %v870_v46  ;;  %v877_v47 = vsel %vm876_vm12, %v873_v45, %v875_v40 }
 0x257   : > { %1584 = vmatmul.bf16.vlgmr.msrb.gmra.mxu2 %v877_v47  ;;  %1745 = vmatpush.bf16.msrb.mxu1 %v2439_v61 }
 0x25b   : > { %1746 = vmatpush.bf16.msrb.mxu1 %v2438_v62 }
 0x25c   : > { %v957_v50 = vpop.permute.xlu0 %956 }
 0x25d   : > { %v926_v51 = vpop.permute.xlu1 %925  ;;  %v965_v58 = vpop.permute.xlu2 %964 }
 0x25e   : > { %v929_v52 = vsel %vm869_vm11, %v926_v51, %v928_v49 }
 0x25f   : > { %1612 = vmatmul.bf16.vlgmr.msra.gmra.mxu0 %v929_v52 }
 0x260   : > { %v1557_v63 = vpop.f32.mrf.mxu0 }
 0x261   : > { %v1558_v12 = vadd.f32 %v2465_v7, %v1557_v63 }
 0x264   : > { %v934_v54 = vpop.permute.xlu0 %933 }
 0x265   : > { %v935_v55 = vsel %vm876_vm12, %v932_v53, %v934_v54  ;;  %v959_v56 = vpop.permute.xlu1 %958 }
 0x266   : > { %v960_v57 = vsel %vm869_vm11, %v957_v50, %v959_v56  ;;  %1626 = vmatmul.bf16.vlgmr.msra.gmra.mxu1 %v935_v55 }
 0x267   : > { %1640 = vmatmul.bf16.vlgmr.msra.gmra.mxu2 %v2799_v48  ;;  %1654 = vmatmul.bf16.vlgmr.msrb.gmra.mxu3 %v960_v57  ;;  %v2437_v48 = vld [vmem:[%s3008_s7 + $0x28] sm:$0xff] }
 0x268   : > { %1747 = vmatpush.bf16.msrb.mxu1 %v2437_v48  ;;  %v1559_v3 = vpop.f32.mrf.mxu0 }
 0x269   : > { %v1560_v17 = vadd.f32 %v2465_v7, %v1559_v3 }
 0x26c   : > { %1748 = vmatpush.bf16.msrb.mxu1 %v2436_v0 }
 0x26d   : > { %v963_v59 = vpop.permute.xlu1 %962  ;;  %v1599_v5 = vpop.f32.mrf.mxu3 }
 0x26e   : > { %v966_v60 = vsel %vm876_vm12, %v963_v59, %v965_v58 }
 0x26f   : > { %1668 = vmatmul.bf16.vlgmr.msrb.gmra.mxu0 %v966_v60 }
 0x270   : > { %1749 = vmatpush.bf16.msrb.mxu1 %v2435_v1 }
 0x274   : > { %1750 = vmatpush.bf16.msrb.mxu1 %v2434_v4 }
 0x275   : > { %v1601_v15 = vpop.f32.mrf.mxu3 }
 0x278   : > { %1751 = vmatpush.bf16.msrb.mxu1 %v2433_v6 }
 0x27c   : > { %1752 = vmatpush.bf16.msrb.mxu1 %v2432_v10 }
 0x2d3   : > { %v1571_v2 = vpop.f32.mrf.mxu1 }
 0x2d4   : > { %v1572_v13 = vadd.f32 %v1571_v2, %v1558_v12 }
 0x2da   : > { %v1585_v8 = vpop.f32.mrf.mxu2 }
 0x2db   : > { %v1573_v9 = vpop.f32.mrf.mxu1  ;;  %v1586_v14 = vadd.f32 %v1585_v8, %v1572_v13 }
 0x2dc   : > { %v1613_v11 = vpop.f32.mrf.mxu0  ;;  %v1574_v20 = vadd.f32 %v1573_v9, %v1560_v17 }
 0x2dd   : > { %v1600_v21 = vadd.f32 %v1599_v5, %v1586_v14 }
 0x2df   : > { %v1614_v23 = vadd.f32 %v1613_v11, %v1600_v21 }
 0x2e2   : > { %v1587_v16 = vpop.f32.mrf.mxu2 }
 0x2e3   : > { %v1627_v19 = vpop.f32.mrf.mxu1  ;;  %v1588_v22 = vadd.f32 %v1587_v16, %v1574_v20 }
 0x2e4   : > { %v1615_v18 = vpop.f32.mrf.mxu0  ;;  %v1628_v27 = vadd.f32 %v1627_v19, %v1614_v23 }
 0x2e5   : > { %v1602_v26 = vadd.f32 %v1601_v15, %v1588_v22 }
 0x2e7   : > { %v1616_v31 = vadd.f32 %v1615_v18, %v1602_v26 }
 0x2ea   : > { %v1641_v24 = vpop.f32.mrf.mxu2  ;;  %v1655_v25 = vpop.f32.mrf.mxu3 }
 0x2eb   : > { %v1642_v29 = vadd.f32 %v1641_v24, %v1628_v27  ;;  %v1629_v30 = vpop.f32.mrf.mxu1 }
 0x2ec   : > { %v1669_v28 = vpop.f32.mrf.mxu0  ;;  %v1630_v33 = vadd.f32 %v1629_v30, %v1616_v31 }
 0x2ed   : > { %v1656_v32 = vadd.f32 %v1655_v25, %v1642_v29 }
 0x2ef   : > { %v1670_v37 = vadd.f32 %v1669_v28, %v1656_v32 }
 0x2f1   : > { %v1674_v41 = vmax.f32 %v1670_v37, 0.0 }
 0x2f2   : > { %v1643_v34 = vpop.f32.mrf.mxu2  ;;  %v1657_v36 = vpop.f32.mrf.mxu3 }
 0x2f3   : > { %v1644_v35 = vadd.f32 %v1643_v34, %v1630_v33 }
 0x2f4   : > { %v1671_v39 = vpop.f32.mrf.mxu0 }
 0x2f5   : > { %v1658_v38 = vadd.f32 %v1657_v36, %v1644_v35 }
 0x2f7   : > { %v1672_v40 = vadd.f32 %v1671_v39, %v1658_v38 }
 0x2f9   : > { %v1675_v42 = vmax.f32 %v1672_v40, 0.0 }
 0x2fb   : > { %v1676_v43 = vpack.c.bf16 %v1675_v42, %v1674_v41 }
 0x2fd   : > { %1753 = vmatmul.bf16.vlgmr.msrb.gmra.mxu1 %v1676_v43 }
 0x37a   : > { %v1754_v45 = vpop.f32.mrf.mxu1 }
 0x37b   : > { %v1755_v46 = vadd.f32 %v2466_v44, %v1754_v45 }
 0x37d   : > { %1760 = vst.msk [vmem:[%s373_s25] sm:$0xff] %vm1759_vm13, %v1755_v46 }
 0x382   : > { %v1756_v47 = vpop.f32.mrf.mxu1 }
 0x383   : > { %v1757_v49 = vadd.f32 %v2466_v44, %v1756_v47 }
 0x385   : > { %1761 = vst.msk [vmem:[%s373_s25 + $0x8] sm:$0xff] %vm1759_vm13, %v1757_v49 }
 0x386 PF: > { %s21_s13 = sadd.s32 1, %s2492_s13  }
 0x387   : > { %p18_p7 = scmp.ge.s32.totalorder %s21_s13, 4  }
 0x389   :  { %20 = sbr.rel (!%p18_p7) target bundleno = 1 (0x1), region = 95 }
 0x38e   :  { %1783 = vsyncpa [#allocation4], 1 }
 0x38f   :  { %1785 = vsyncpa [#allocation4 + $0x1], 1 }

</bundles_post_ra>
